<compile_context>
chip_gen: v5e
topology: v5e:2x2
jax: 0.10.0
libtpu: 0.0.40
codegen_flags: <defaults>
</compile_context>

<pallas_src>
import jax
import jax.numpy as jnp
from jax.experimental import pallas as pl
from jax.experimental.pallas import tpu as pltpu


def _round_up(v, m):
    return ((v + m - 1) // m) * m


def _divisors_desc(n, align):
    """Divisors of n (descending), each a multiple of `align` or equal to n, so the
    value is always legal as a second-to-last block dimension."""
    return [d for d in range(n, 0, -1) if n % d == 0 and (d % align == 0 or d == n)]


def _vmem_budget_bytes():
    """Per-generation VMEM budget (physical capacity with headroom)."""
    cap = 128 * 1024 * 1024  # v5e / v6e physical; v7x reports 64 MiB via get_tpu_info
    try:
        info = pltpu.get_tpu_info()
        cap = int(getattr(info, "vmem_capacity_bytes", cap)) or cap
    except Exception:
        pass
    return (cap * 3) // 4  # headroom for compiler scratch / spills


def _pick_tiles(B, N, D, Hp, x_itemsize, budget, bags_cap):
    """Pick (bags-per-step bt, instance-tile nt) so the pipeline fits the VMEM budget."""
    # Weights have a constant index_map but the default pipeline double-buffers them.
    w_bytes = 2 * (D * 2 * Hp * x_itemsize + 3 * Hp * 4)
    bt_cands = [d for d in _divisors_desc(B, 8) if d <= bags_cap] or [B]
    # Prefer >= 2 batch-grid steps so the "parallel" axis can shard across both v7x TCs
    # (no effect on single-TC v5e/v6e).
    multi = [d for d in bt_cands if B // d >= 2]
    bt_cands = multi + [d for d in bt_cands if d not in multi]
    nt_cands = _divisors_desc(N, 8)
    for bt in bt_cands:
        out_bytes = 2 * bt * N * 4                      # resident (bt, N) f32 block
        for nt in nt_cands:
            x_bytes = 2 * bt * nt * D * x_itemsize      # double-buffered x stream
            tmp_bytes = bt * nt * (3 * Hp + D) * 4      # ab / gated / x2 f32 temporaries
            if w_bytes + out_bytes + x_bytes + tmp_bytes <= budget:
                return bt, nt
    return min(bt_cands), min(nt_cands)                 # smallest legal tiles (fallback)


def abmil_kernel(x_ref, wab_ref, bab_ref, wc_ref, bc_ref, out_ref):
    n = pl.program_id(1)
    bt, nt, d = x_ref.shape
    n_full = out_ref.shape[1]
    hp = wc_ref.shape[1]

    # (bt, nt, D) -> (bt*nt, D): grows the MXU M dimension.  Layout-free when nt is a
    # multiple of the sublane packing (8 for f32, 16 for bf16); otherwise a tiny relayout.
    x2 = x_ref[...].reshape(bt * nt, d)

    # Fused attention_a / attention_b projections: one (bt*nt, D) @ (D, 2*Hp) MXU matmul
    # with f32 accumulation.  Wa/Wb halves sit at 128-lane-aligned offsets 0 / Hp, so the
    # two slices below are free views.
    ab = jnp.dot(x2, wab_ref[...], preferred_element_type=jnp.float32) + bab_ref[...]
    a = jnp.tanh(ab[:, :hp])            # attention_a: Linear + Tanh    (EUP)
    b = jax.nn.sigmoid(ab[:, hp:])      # attention_b: Linear + Sigmoid (EUP)
    gated = (a * b).reshape(bt, nt, hp)

    # attention_c with n_classes == 1: weighted lane-reduce (padded wc columns are zero).
    # The resulting (bt, nt) lane-dense repack is tiny and hides under the x DMA.
    logits = jnp.sum(gated * wc_ref[...], axis=-1) + bc_ref[0]      # (bt, nt) f32

    if nt == n_full:
        # Single N tile (static): plain full-block store, no dynamic lane slicing.
        out_ref[...] = logits
    else:
        # Stash raw logits of this N tile into the resident (bt, N) output block.
        start = pl.multiple_of(n * nt, nt)
        out_ref[:, pl.ds(start, nt)] = logits

    # Last step over the instance axis: softmax over N (torch dim=1), computed in place
    # on the resident output block.  Exact normalization (rows sum to 1).
    @pl.when(n == pl.num_programs(1) - 1)
    def _finalize():
        full = out_ref[...]                              # (bt, N) raw logits
        m = jnp.max(full, axis=-1, keepdims=True)
        e = jnp.exp(full - m)
        s = jnp.sum(e, axis=-1, keepdims=True)
        out_ref[...] = e / s


def batched_abmil(x, wa, ba, wb, bb, wc, bc, *, mxu_dtype=jnp.bfloat16, bags_cap=64):
    """Forward of BatchedABMIL (activation='softmax', n_classes=1, no dropout).

    x: (B, N, D) float32.  wa/wb: (D, H), ba/bb: (1, H), wc: (H, 1), bc: (1, 1).
    Returns softmax attention weights (B, N, 1) in float32.
    mxu_dtype: dtype used to stream x / Wa||Wb (default bf16; accumulation is f32).
    """
    B, N, D = x.shape
    H = wa.shape[1]
    C = wc.shape[1]
    assert C == 1, "kernel is specialized to n_classes == 1 (module default)"

    f32 = jnp.float32
    Hp = _round_up(max(H, 1), 128)   # 128-lane-aligned half so the a/b split is free

    # Pack Wa||Wb into one (D, 2*Hp) matrix (each half at a 128-aligned lane offset);
    # zero-pad the extra columns -- they are killed by the zero-padded wc row.
    wab = jnp.zeros((D, 2 * Hp), f32)
    wab = wab.at[:, :H].set(wa.astype(f32)).at[:, Hp:Hp + H].set(wb.astype(f32))
    bab = jnp.zeros((1, 2 * Hp), f32)
    bab = bab.at[:, :H].set(ba.reshape(1, H).astype(f32))
    bab = bab.at[:, Hp:Hp + H].set(bb.reshape(1, H).astype(f32))
    wc_row = jnp.zeros((1, Hp), f32).at[:, :H].set(wc.reshape(1, H).astype(f32))
    bc1 = bc.reshape(1).astype(f32)                       # SMEM scalar

    x_dtype = jnp.dtype(mxu_dtype) if mxu_dtype is not None else jnp.dtype(x.dtype)
    xk = x.astype(x_dtype)
    wabk = wab.astype(x_dtype)

    vmem_budget = _vmem_budget_bytes()                    # per-generation, with headroom
    tile_budget = (vmem_budget * 4) // 5                  # room for compiler temporaries
    bt, nt = _pick_tiles(B, N, D, Hp, x_dtype.itemsize, tile_budget, bags_cap)

    grid = (B // bt, N // nt)

    cost = pl.CostEstimate(
        flops=4 * B * N * D * Hp + 6 * B * N * Hp,
        transcendentals=2 * B * N * Hp + B * N,
        bytes_accessed=int(xk.size) * x_dtype.itemsize
        + int(wabk.size) * x_dtype.itemsize
        + (int(bab.size) + int(wc_row.size) + 1 + B * N) * 4,
    )

    out2d = pl.pallas_call(
        abmil_kernel,
        out_shape=jax.ShapeDtypeStruct((B, N), jnp.float32),
        grid_spec=pltpu.PrefetchScalarGridSpec(
            num_scalar_prefetch=0,
            grid=grid,
            in_specs=[
                pl.BlockSpec((bt, nt, D), lambda i, n: (i, n, 0)),     # x stream
                pl.BlockSpec(wabk.shape, lambda i, n: (0, 0)),         # Wa||Wb (constant)
                pl.BlockSpec(bab.shape, lambda i, n: (0, 0)),          # ba||bb (constant)
                pl.BlockSpec(wc_row.shape, lambda i, n: (0, 0)),       # wc row (constant)
                pl.BlockSpec(memory_space=pltpu.MemorySpace.SMEM),     # bc scalar
            ],
            # Lane-dense (bt, N) output block, resident across the N ("arbitrary") axis.
            out_specs=pl.BlockSpec((bt, N), lambda i, n: (i, 0)),
        ),
        compiler_params=pltpu.CompilerParams(
            dimension_semantics=("parallel", "arbitrary"),
            vmem_limit_bytes=int(vmem_budget),
        ),
        cost_estimate=cost,
    )(xk, wabk, bab, wc_row, bc1)

    # Caller-facing shape matches the PyTorch module: (B, N, n_classes).
    return out2d[..., None]


def batched_abmil_ref(x, wa, ba, wb, bb, wc, bc):
    """Pure-JAX reference mirroring the PyTorch forward (activation='softmax')."""
    hi = jax.lax.Precision.HIGHEST
    a = jnp.tanh(jnp.einsum("bnd,dh->bnh", x, wa, precision=hi) + ba)
    b = jax.nn.sigmoid(jnp.einsum("bnd,dh->bnh", x, wb, precision=hi) + bb)
    A = jnp.einsum("bnh,hc->bnc", a * b, wc, precision=hi) + bc
    return jax.nn.softmax(A, axis=1)


if __name__ == "__main__":
    # Small shapes consistent with the module's forward: x is (B, N, input_dim).
    # N = 16 keeps the bf16 sublane-packed (bt, nt, D) -> (bt*nt, D) merge layout-free.
    B, N, D, H, C = 2, 16, 64, 32, 1

    key = jax.random.PRNGKey(0)
    kx, ka, kab, kb, kbb, kc, kcb = jax.random.split(key, 7)

    def uinit(k, shape, fan_in):
        bound = 1.0 / jnp.sqrt(fan_in)
        return jax.random.uniform(k, shape, jnp.float32, -bound, bound)

    x = jax.random.normal(kx, (B, N, D), jnp.float32)
    wa = uinit(ka, (D, H), D)
    ba = uinit(kab, (1, H), D)
    wb = uinit(kb, (D, H), D)
    bb = uinit(kbb, (1, H), D)
    wc = uinit(kc, (H, C), H)
    bc = uinit(kcb, (1, C), H)

    ref = batched_abmil_ref(x, wa, ba, wb, bb, wc, bc)

    # Default (bandwidth-optimized) path: bf16 streaming of x / Wa||Wb, f32 accumulation.
    out_bf16 = jax.block_until_ready(batched_abmil(x, wa, ba, wb, bb, wc, bc))
    assert out_bf16.shape == (B, N, C)
    assert jnp.allclose(out_bf16, ref, atol=3e-3, rtol=3e-2), "bf16 path mismatch vs ref"

    # Full-f32 path: strict reference check.
    out_f32 = jax.block_until_ready(
        batched_abmil(x, wa, ba, wb, bb, wc, bc, mxu_dtype=jnp.float32))
    assert out_f32.shape == (B, N, C)
    assert jnp.allclose(out_f32, ref, atol=3e-4, rtol=3e-3), "f32 path mismatch vs ref"

    # TODO(synk): dropout(p=0.25) training branch and non-default activations
    # (relu/leaky_relu/sigmoid) of the PyTorch module are not implemented here.
    print("KERNEL_OK")
</pallas_src>

<mosaic_0001>
module attributes {stable_mosaic.version = 11 : i64} {
  func.func @abmil_kernel(%arg0: i32, %arg1: i32, %arg2: memref<2x16x64xbf16, #tpu.memory_space<vmem>>, %arg3: memref<64x256xbf16, #tpu.memory_space<vmem>>, %arg4: memref<1x256xf32, #tpu.memory_space<vmem>>, %arg5: memref<1x128xf32, #tpu.memory_space<vmem>>, %arg6: memref<1xf32, #tpu.memory_space<smem>>, %arg7: memref<2x16xf32, #tpu.memory_space<vmem>>) attributes {dimension_semantics = [#tpu.dimension_semantics<parallel>, #tpu.dimension_semantics<arbitrary>], iteration_bounds = array<i64: 1, 1>, scalar_prefetch = 0 : i64, scratch_operands = 0 : i64, tpu.core_type = #tpu.core_type<tc>, window_params = [{transform_indices = @transform_0, window_bounds = array<i64: 2, 16, 64>}, {pipeline_mode = #tpu.pipeline_mode<synchronous>, transform_indices = @transform_1, window_bounds = array<i64: 64, 256>}, {pipeline_mode = #tpu.pipeline_mode<synchronous>, transform_indices = @transform_2, window_bounds = array<i64: 1, 256>}, {pipeline_mode = #tpu.pipeline_mode<synchronous>, transform_indices = @transform_3, window_bounds = array<i64: 1, 128>}, {transform_indices = @transform_4, window_bounds = array<i64: 1>}, {transform_indices = @transform_5, window_bounds = array<i64: 2, 16>}]} {
    %c0 = arith.constant 0 : index
    %c0_0 = arith.constant 0 : index
    %c0_1 = arith.constant 0 : index
    %0 = vector.load %arg2[%c0, %c0_0, %c0_1] : memref<2x16x64xbf16, #tpu.memory_space<vmem>>, vector<2x16x64xbf16>
    %1 = vector.shape_cast %0 : vector<2x16x64xbf16> to vector<32x64xbf16>
    %c0_2 = arith.constant 0 : index
    %c0_3 = arith.constant 0 : index
    %2 = vector.load %arg3[%c0_2, %c0_3] : memref<64x256xbf16, #tpu.memory_space<vmem>>, vector<64x256xbf16>
    %cst = arith.constant dense<0.000000e+00> : vector<32x256xf32>
    %3 = tpu.matmul %1, %2, %cst {dimension_numbers = #tpu.dot_dimension_numbers<[1], [0], [0], [1], [0, 0, 1, 1], [], []>} : vector<32x64xbf16>, vector<64x256xbf16>, vector<32x256xf32> -> vector<32x256xf32>
    %c0_4 = arith.constant 0 : index
    %c0_5 = arith.constant 0 : index
    %4 = vector.load %arg4[%c0_4, %c0_5] : memref<1x256xf32, #tpu.memory_space<vmem>>, vector<1x256xf32>
    %5 = vector.broadcast %4 : vector<1x256xf32> to vector<32x256xf32>
    %6 = arith.addf %3, %5 : vector<32x256xf32>
    %7 = vector.extract_strided_slice %6 {offsets = [0, 0], sizes = [32, 128], strides = [1, 1]} : vector<32x256xf32> to vector<32x128xf32>
    %8 = math.tanh %7 : vector<32x128xf32>
    %9 = vector.extract_strided_slice %6 {offsets = [0, 128], sizes = [32, 128], strides = [1, 1]} : vector<32x256xf32> to vector<32x128xf32>
    %10 = arith.negf %9 : vector<32x128xf32>
    %11 = math.exp %10 : vector<32x128xf32>
    %cst_6 = arith.constant 1.000000e+00 : f32
    %12 = vector.broadcast %cst_6 : f32 to vector<32x128xf32>
    %13 = arith.addf %12, %11 : vector<32x128xf32>
    %14 = arith.divf %12, %13 : vector<32x128xf32>
    %15 = arith.mulf %8, %14 : vector<32x128xf32>
    %16 = vector.shape_cast %15 : vector<32x128xf32> to vector<2x16x128xf32>
    %c0_7 = arith.constant 0 : index
    %c0_8 = arith.constant 0 : index
    %17 = vector.load %arg5[%c0_7, %c0_8] : memref<1x128xf32, #tpu.memory_space<vmem>>, vector<1x128xf32>
    %18 = vector.shape_cast %17 : vector<1x128xf32> to vector<1x1x128xf32>
    %19 = vector.broadcast %18 : vector<1x1x128xf32> to vector<2x16x128xf32>
    %20 = arith.mulf %16, %19 : vector<2x16x128xf32>
    %cst_9 = arith.constant dense<0.000000e+00> : vector<2x16xf32>
    %21 = vector.multi_reduction <add>, %20, %cst_9 [2] : vector<2x16x128xf32> to vector<2x16xf32>
    %c0_10 = arith.constant 0 : index
    %22 = memref.load %arg6[%c0_10] : memref<1xf32, #tpu.memory_space<smem>>
    %23 = vector.broadcast %22 : f32 to vector<2x16xf32>
    %24 = arith.addf %21, %23 : vector<2x16xf32>
    %c0_11 = arith.constant 0 : index
    %c0_12 = arith.constant 0 : index
    %25 = vector.load %arg7[%c0_11, %c0_12] : memref<2x16xf32, #tpu.memory_space<vmem>>, vector<2x16xf32>
    tpu.vector_store %arg7[%c0_11, %c0_12], %24 {strides = array<i32>} : memref<2x16xf32, #tpu.memory_space<vmem>>, vector<2x16xf32>,
    %c0_i32 = arith.constant 0 : i32
    %26 = arith.cmpi eq, %arg1, %c0_i32 : i32
    %27 = arith.extui %26 : i1 to i32
    %c0_i32_13 = arith.constant 0 : i32
    %28 = arith.cmpi ne, %27, %c0_i32_13 : i32
    scf.if %28 {
      %c0_14 = arith.constant 0 : index
      %c0_15 = arith.constant 0 : index
      %29 = vector.load %arg7[%c0_14, %c0_15] : memref<2x16xf32, #tpu.memory_space<vmem>>, vector<2x16xf32>
      %cst_16 = arith.constant dense<0xFF800000> : vector<2xf32>
      %30 = vector.multi_reduction <maximumf>, %29, %cst_16 [1] : vector<2x16xf32> to vector<2xf32>
      %31 = vector.shape_cast %30 : vector<2xf32> to vector<2x1xf32>
      %32 = vector.broadcast %31 : vector<2x1xf32> to vector<2x16xf32>
      %33 = arith.subf %29, %32 : vector<2x16xf32>
      %34 = math.exp %33 : vector<2x16xf32>
      %cst_17 = arith.constant dense<0.000000e+00> : vector<2xf32>
      %35 = vector.multi_reduction <add>, %34, %cst_17 [1] : vector<2x16xf32> to vector<2xf32>
      %36 = vector.shape_cast %35 : vector<2xf32> to vector<2x1xf32>
      %37 = vector.broadcast %36 : vector<2x1xf32> to vector<2x16xf32>
      %38 = arith.divf %34, %37 : vector<2x16xf32>
      %c0_18 = arith.constant 0 : index
      %c0_19 = arith.constant 0 : index
      %39 = vector.load %arg7[%c0_18, %c0_19] : memref<2x16xf32, #tpu.memory_space<vmem>>, vector<2x16xf32>
      tpu.vector_store %arg7[%c0_18, %c0_19], %38 {strides = array<i32>} : memref<2x16xf32, #tpu.memory_space<vmem>>, vector<2x16xf32>,
    } else {
    }
    return
  }
  func.func @transform_0(%arg0: i32, %arg1: i32) -> (i32, i32, i32) {
    %c0_i32 = arith.constant 0 : i32
    %c0_i32_0 = arith.constant 0 : i32
    return %arg0, %arg1, %c0_i32 : i32, i32, i32
  }
  func.func @transform_1(%arg0: i32, %arg1: i32) -> (i32, i32) {
    %c0_i32 = arith.constant 0 : i32
    %c0_i32_0 = arith.constant 0 : i32
    %c0_i32_1 = arith.constant 0 : i32
    return %c0_i32, %c0_i32_0 : i32, i32
  }
  func.func @transform_2(%arg0: i32, %arg1: i32) -> (i32, i32) {
    %c0_i32 = arith.constant 0 : i32
    %c0_i32_0 = arith.constant 0 : i32
    %c0_i32_1 = arith.constant 0 : i32
    return %c0_i32, %c0_i32_0 : i32, i32
  }
  func.func @transform_3(%arg0: i32, %arg1: i32) -> (i32, i32) {
    %c0_i32 = arith.constant 0 : i32
    %c0_i32_0 = arith.constant 0 : i32
    %c0_i32_1 = arith.constant 0 : i32
    return %c0_i32, %c0_i32_0 : i32, i32
  }
  func.func @transform_4(%arg0: i32, %arg1: i32) -> i32 {
    %c0_i32 = arith.constant 0 : i32
    %c0_i32_0 = arith.constant 0 : i32
    return %c0_i32 : i32
  }
  func.func @transform_5(%arg0: i32, %arg1: i32) -> (i32, i32) {
    %c0_i32 = arith.constant 0 : i32
    %c0_i32_0 = arith.constant 0 : i32
    return %arg0, %c0_i32 : i32, i32
  }
}

</mosaic_0001>

<bundles_post_ra>
// kernel: tpu_custom_call.1
= control target key start
LH: loop header
LB: loop body
LE: loop exit
PB: predicated region body
PF: predicated region fallthrough
CT: control target
= control target key end

     0   :  { %11 = vsyncpa [#allocation4], 0  ;;  %s594_s0 = inlined_call_operand.hbm [shape: bf16[2,16,64], index: 0, kind: input, shape index: {}]   ;;  %s595_s1 = inlined_call_operand.hbm [shape: bf16[64,256], index: 1, kind: input, shape index: {}]   ;;  %s596_s2 = inlined_call_operand.vmem [shape: f32[1,256], index: 2, kind: input, shape index: {}]   ;;  %s597_s3 = inlined_call_operand.vmem [shape: f32[1,128], index: 3, kind: input, shape index: {}]   ;;  %s598_s4 = inlined_call_operand.<no memory space> [shape: f32[1], index: 4, kind: input, shape index: {}]   ;;  %s599_s5 = inlined_call_operand.hbm [shape: f32[2,16], index: 5, kind: output, shape index: {}]  }
   0x1   :  { %12 = vsyncpa [#allocation7], 0 }
   0x2   :  { %13 = vsyncpa [#allocation5], 0  ;;  %s18_s20 = sshll.u32 %s594_s0, 4  ;;  %s521_s21 = smov [#allocation3]   ;;  %s19_s20 = int_to_ptr.hbm [resolvable:$true] %s18_s20 }
   0x3   :  { %s20_s22 = sshll.u32 %s521_s21, 4  ;;  %s31_s25 = sshll.u32 %s595_s1, 4  ;;  %s21_s22 = int_to_ptr.vmem [resolvable:$true] %s20_s22  ;;  %s32_s25 = int_to_ptr.hbm [resolvable:$true] %s31_s25 }
   0x4   :  { %s522_s26 = smov 64   ;;  %s523_s27 = smov 4  }
   0x5   :  { %26 = dma.hbm_to_vmem [thread:$0]  %s19_s20, 256, %s21_s22, [#allocation4], %s522_s26, %s522_s26, %s523_s27  }
   0x6   :  { %s524_s28 = smov [#allocation6]   ;;  %s525_s30 = smov 128  }
   0x7   :  { %s33_s29 = sshll.u32 %s524_s28, 4  ;;  %s526_s6 = smov 8   ;;  %s34_s29 = int_to_ptr.vmem [resolvable:$true] %s33_s29 }
   0x8   :  { %39 = dma.hbm_to_vmem [thread:$0]  %s32_s25, 1024, %s34_s29, [#allocation7], %s525_s30, %s525_s30, %s526_s6  }
   0x9   :  { %515 = dma.done.wait [#allocation4], 256  }
   0xa   :  { %516 = vsyncadd [#allocation4], 4294967040 }
   0xb   :  { %517 = dma.done.wait [#allocation7], 1024  }
   0xc   :  { %518 = vsyncadd [#allocation7], 4294966272  ;;  %v397_v0 = vld [vmem:[#allocation6 + $0x34] sm:$0xf]  ;;  %v377_v1 = vld [vmem:[#allocation6 + $0x38] sm:$0xf0] }
   0xd   :  { %v395_v2 = vld [vmem:[#allocation6 + $0x24] sm:$0xf]  ;;  %v380_v3 = vor.u32 %v397_v0, %v377_v1  ;;  %v369_v4 = vld [vmem:[#allocation6 + $0x28] sm:$0xf0]  ;;  %v375_v5 = vld [vmem:[#allocation6 + $0x30] sm:$0xf] }
   0xe   :  { %v372_v6 = vor.u32 %v395_v2, %v369_v4  ;;  %v393_v7 = vld [vmem:[#allocation6 + $0x14] sm:$0xf]  ;;  %v398_v8 = vld [vmem:[#allocation6 + $0x34] sm:$0xf0]  ;;  %v361_v9 = vld [vmem:[#allocation6 + $0x18] sm:$0xf0] }
   0xf   :  { %153 = vmatpush.bf16.msra.mxu1 %v380_v3  ;;  %403 = vmatpush.bf16.msra.mxu3 %v380_v3  ;;  %v376_v10 = vor.u32 %v398_v8, %v375_v5  ;;  %v367_v11 = vld [vmem:[#allocation6 + $0x20] sm:$0xf]  ;;  %v396_v12 = vld [vmem:[#allocation6 + $0x24] sm:$0xf0]  ;;  %v364_v14 = vor.u32 %v393_v7, %v361_v9  ;;  %v359_v15 = vld [vmem:[#allocation6 + $0x10] sm:$0xf] }
  0x10   :  { %v368_v13 = vor.u32 %v396_v12, %v367_v11  ;;  %v394_v16 = vld [vmem:[#allocation6 + $0x14] sm:$0xf0]  ;;  %v391_v17 = vld [vmem:[#allocation6 + $0x4] sm:$0xf]  ;;  %v353_v18 = vld [vmem:[#allocation6 + $0x8] sm:$0xf0] }
  0x11   :  { %399 = vmatpush.bf16.msra.mxu2 %v376_v10  ;;  %134 = vmatpush.bf16.msra.mxu0 %v376_v10  ;;  %v360_v19 = vor.u32 %v394_v16, %v359_v15  ;;  %v356_v20 = vor.u32 %v391_v17, %v353_v18  ;;  %v351_v21 = vld [vmem:[#allocation6] sm:$0xf]  ;;  %v392_v22 = vld [vmem:[#allocation6 + $0x4] sm:$0xf0]  ;;  %v389_v23 = vld [vmem:[#allocation3] sm:$0xff]  ;;  %vm123_vm0 = vcmask 523264  }
  0x12   :  { %v390_v24 = vld [vmem:[#allocation3 + $0x8] sm:$0xff]  ;;  %v352_v25 = vor.u32 %v392_v22, %v351_v21  ;;  %v67_v26 = vld [vmem:[%s596_s2] sm:$0x3]  ;;  %s330_s12 = sshll.u32 %s599_s5, 4  ;;  %s331_s12 = int_to_ptr.hbm [resolvable:$true] %s330_s12 }
  0x13   :  { %154 = vmatpush.bf16.msra.mxu1 %v372_v6  ;;  %404 = vmatpush.bf16.msra.mxu3 %v372_v6  ;;  %v70_v27 = vperm.slane %v67_v26, 1  ;;  %v69_v39 = vperm.slane %v67_v26, 0  ;;  %v414_v4 = vld [vmem:[%s597_s3] ss:$0 sm:$0xff] }
  0x15   :  { %400 = vmatpush.bf16.msra.mxu2 %v368_v13  ;;  %135 = vmatpush.bf16.msra.mxu0 %v368_v13 }
  0x17   :  { %155 = vmatpush.bf16.msra.mxu1 %v364_v14  ;;  %405 = vmatpush.bf16.msra.mxu3 %v364_v14 }
  0x19   :  { %401 = vmatpush.bf16.msra.mxu2 %v360_v19  ;;  %136 = vmatpush.bf16.msra.mxu0 %v360_v19 }
  0x1b   :  { %156 = vmatpush.bf16.msra.mxu1 %v356_v20  ;;  %406 = vmatpush.bf16.msra.mxu3 %v356_v20 }
  0x1d   :  { %402 = vmatpush.bf16.msra.mxu2 %v352_v25  ;;  %137 = vmatpush.bf16.msra.mxu0 %v352_v25 }
  0x1e   :  { %383 = vmatmul.msk.bf16.vlgmr.msra.gmra.mxu1 %vm123_vm0, %v389_v23  ;;  %384 = vmatmul.msk.bf16.vlgmr.msra.gmra.mxu3 %vm123_vm0, %v390_v24 }
  0x20   :  { %382 = vmatmul.msk.bf16.vlgmr.msra.gmra.mxu2 %vm123_vm0, %v390_v24  ;;  %381 = vmatmul.msk.bf16.vlgmr.msra.gmra.mxu0 %vm123_vm0, %v389_v23 }
  0x9b   :  { %v158_v28 = vpop.f32.mrf.mxu1 }
  0x9c   :  { %v159_v29 = vadd.f32 %v158_v28, %v70_v27 }
  0x9d   :  { %v139_v42 = vpop.f32.mrf.mxu0 }
  0x9e   :  { %v385_v30 = vmul.f32 -1.442695, %v159_v29  ;;  %v140_v45 = vadd.f32 %v139_v42, %v69_v39 }
  0xa0   :  { %415 = vpow2.f32 %v385_v30 }
  0xa1   :  { %v163_v31 = vpop.f32.mrf.mxu3 }
  0xa2   :  { %v164_v32 = vadd.f32 %v163_v31, %v70_v27 }
  0xa3   :  { %v160_v33 = vpop.f32.mrf.mxu1  ;;  %v144_v50 = vpop.f32.mrf.mxu2 }
  0xa4   :  { %v387_v34 = vmul.f32 -1.442695, %v164_v32  ;;  %v161_v35 = vadd.f32 %v160_v33, %v70_v27  ;;  %v145_v52 = vadd.f32 %v144_v50, %v69_v39 }
  0xa5   :  { %v141_v56 = vpop.f32.mrf.mxu0 }
  0xa6   :  { %v416_v36 = vpop.eup %415  ;;  %417 = vpow2.f32 %v387_v34  ;;  %v386_v37 = vmul.f32 -1.442695, %v161_v35  ;;  %v142_v1 = vadd.f32 %v141_v56, %v69_v39 }
  0xa7   :  { %v184_v38 = vadd.f32 1.0, %v416_v36 }
  0xa8   :  { %419 = vpow2.f32 %v386_v37 }
  0xa9   :  { %421 = vrcp.f32 %v184_v38  ;;  %v165_v40 = vpop.f32.mrf.mxu3  ;;  %v199_v54 = vand.u32 2147483648, %v184_v38  ;;  %vm193_vm1 = vweird.f32 %v184_v38  ;;  %v197_v58 = vand.u32 2147483647, %v184_v38 }
  0xaa   :  { %v166_v41 = vadd.f32 %v165_v40, %v70_v27 }
  0xab   :  { %v200_v2 = vor.u32 1.1754944e-38, %v199_v54  ;;  %vm198_vm4 = vcmp.eq.f32.partialorder %v197_v58, 8.507059e+37  ;;  %v146_v10 = vpop.f32.mrf.mxu2 }
  0xac   :  { %v418_v43 = vpop.eup %417  ;;  %v388_v44 = vmul.f32 -1.442695, %v166_v41  ;;  %v147_v21 = vadd.f32 %v146_v10, %v69_v39 }
  0xad   :  { %v186_v46 = vadd.f32 1.0, %v418_v43 }
  0xae   :  { %v420_v47 = vpop.eup %419  ;;  %423 = vpow2.f32 %v388_v44 }
  0xaf   :  { %v422_v48 = vpop.eup %421  ;;  %425 = vrcp.f32 %v186_v46  ;;  %v567_v49 = vadd.f32 1.0, %v420_v47  ;;  %v227_v8 = vand.u32 2147483647, %v186_v46  ;;  %v229_v9 = vand.u32 2147483648, %v186_v46 }
  0xb0   :  { %427 = vtanh.f32 %v140_v45  ;;  %v189_v51 = vmul.f32 %v422_v48, %v184_v38  ;;  %vm194_vm2 = vweird.f32 %v422_v48  ;;  %vm223_vm6 = vweird.f32 %v186_v46 }
  0xb1   :  { %429 = vrcp.f32 %v567_v49  ;;  %vm195_vm3 = vmor %vm193_vm1, %vm194_vm2  ;;  %v212_v14 = vand.u32 2147483647, %v567_v49  ;;  %v214_v15 = vand.u32 2147483648, %v567_v49  ;;  %vm228_vm9 = vcmp.eq.f32.partialorder %v227_v8, 8.507059e+37 }
  0xb2   :  { %v190_v53 = vsub.f32 1.0, %v189_v51  ;;  %431 = vtanh.f32 %v145_v52  ;;  %v230_v22 = vor.u32 1.1754944e-38, %v229_v9  ;;  %vm208_vm10 = vweird.f32 %v567_v49 }
  0xb3   :  { %v215_v27 = vor.u32 1.1754944e-38, %v214_v15  ;;  %vm213_vm12 = vcmp.eq.f32.partialorder %v212_v14, 8.507059e+37  ;;  %v278_v47 = vlaneseq  ;;  %v269_v51 = vstv %s598_s4  ;;  %s527_s4 = smov [#allocation8]  }
  0xb4   :  { %v424_v55 = vpop.eup %423  ;;  %v191_v57 = vmul.f32 %v422_v48, %v190_v53  ;;  %vm283_vm1 = vcmask 130112   ;;  %vm288_vm2 = vcmask 1041409   ;;  %s328_s9 = sshll.u32 %s527_s4, 4  ;;  %s329_s9 = int_to_ptr.vmem [resolvable:$true] %s328_s9 }
  0xb5   :  { %v426_v59 = vpop.eup %425  ;;  %v570_v60 = vadd.f32 1.0, %v424_v55  ;;  %v279_v50 = vand.u32 127, %v278_v47 }
  0xb6   :  { %v428_v61 = vpop.eup %427  ;;  %v192_v62 = vadd.f32 %v422_v48, %v191_v57  ;;  %v219_v63 = vmul.f32 %v426_v59, %v186_v46  ;;  %vm224_vm5 = vweird.f32 %v426_v59 }
  0xb7   :  { %v430_v0 = vpop.eup %429  ;;  %433 = vrcp.f32 %v570_v60  ;;  %vm225_vm8 = vmor %vm223_vm6, %vm224_vm5  ;;  %v242_v33 = vand.u32 2147483647, %v570_v60  ;;  %v244_v34 = vand.u32 2147483648, %v570_v60  ;;  %vm238_vm14 = vweird.f32 %v570_v60 }
  0xb8   :  { %v196_v3 = vsel %vm195_vm3, %v422_v48, %v192_v62  ;;  %v220_v5 = vsub.f32 1.0, %v219_v63  ;;  %v204_v6 = vmul.f32 %v430_v0, %v567_v49  ;;  %435 = vtanh.f32 %v142_v1  ;;  %v432_v16 = vpop.eup %431 }
  0xb9   :  { %v201_v7 = vsel %vm198_vm4, %v200_v2, %v196_v3  ;;  %vm209_vm7 = vweird.f32 %v430_v0  ;;  %437 = vtanh.f32 %v147_v21  ;;  %v245_v40 = vor.u32 1.1754944e-38, %v244_v34 }
  0xba   :  { %v248_v11 = vmul.f32 %v428_v61, %v201_v7  ;;  %v221_v12 = vmul.f32 %v426_v59, %v220_v5  ;;  %v205_v13 = vsub.f32 1.0, %v204_v6  ;;  %vm210_vm11 = vmor %vm208_vm10, %vm209_vm7  ;;  %vm243_vm0 = vcmp.eq.f32.partialorder %v242_v33, 8.507059e+37 }
  0xbb   :  { %v281_v52 = vadd.s32 4294967288, %v279_v50  ;;  %vm291_vm3 = vcmask 123904  }
  0xbc   :  { %v256_v17 = vmul.f32 %v414_v4, %v248_v11  ;;  %v222_v18 = vadd.f32 %v426_v59, %v221_v12  ;;  %v206_v19 = vmul.f32 %v430_v0, %v205_v13 }
  0xbd   :  { %v434_v20 = vpop.eup %433 }
  0xbe   :  { %260 = vadd.xlane.f32.xlu0 %v256_v17  ;;  %v226_v23 = vsel %vm225_vm8, %v426_v59, %v222_v18  ;;  %v207_v24 = vadd.f32 %v430_v0, %v206_v19  ;;  %v234_v25 = vmul.f32 %v434_v20, %v570_v60  ;;  %v436_v31 = vpop.eup %435  ;;  %vm239_vm13 = vweird.f32 %v434_v20 }
  0xbf   :  { %v231_v26 = vsel %vm228_vm9, %v230_v22, %v226_v23  ;;  %vm240_vm15 = vmor %vm238_vm14, %vm239_vm13  ;;  %v438_v42 = vpop.eup %437 }
  0xc0   :  { %v250_v28 = vmul.f32 %v432_v16, %v231_v26  ;;  %v211_v29 = vsel %vm210_vm11, %v430_v0, %v207_v24  ;;  %v235_v30 = vsub.f32 1.0, %v234_v25 }
  0xc1   :  { %v216_v32 = vsel %vm213_vm12, %v215_v27, %v211_v29 }
  0xc2   :  { %v258_v35 = vmul.f32 %v414_v4, %v250_v28  ;;  %v249_v36 = vmul.f32 %v436_v31, %v216_v32  ;;  %v236_v37 = vmul.f32 %v434_v20, %v235_v30 }
  0xc4   :  { %264 = vadd.xlane.f32.xlu1 %v258_v35  ;;  %v257_v38 = vmul.f32 %v414_v4, %v249_v36  ;;  %v237_v39 = vadd.f32 %v434_v20, %v236_v37 }
  0xc6   :  { %262 = vadd.xlane.f32.xlu0 %v257_v38  ;;  %v241_v41 = vsel %vm240_vm15, %v434_v20, %v237_v39 }
  0xc7   :  { %v246_v43 = vsel %vm243_vm0, %v245_v40, %v241_v41 }
  0xc8   :  { %v251_v44 = vmul.f32 %v438_v42, %v246_v43 }
  0xca   :  { %v259_v45 = vmul.f32 %v414_v4, %v251_v44 }
  0xcc   :  { %266 = vadd.xlane.f32.xlu1 %v259_v45 }
 0x131   :  { %v261_v46 = vpop.xlane.xlu0 %260 }
 0x132   :  { %v270_v54 = vadd.f32 %v269_v51, %v261_v46 }
 0x134   :  { %v280_v59 = vperm.slane %v270_v54, %v279_v50 }
 0x137   :  { %v265_v48 = vpop.xlane.xlu1 %264 }
 0x138   :  { %v272_v55 = vadd.f32 %v269_v51, %v265_v48 }
 0x139   :  { %v263_v49 = vpop.xlane.xlu0 %262 }
 0x13a   :  { %v271_v53 = vadd.f32 %v269_v51, %v263_v49  ;;  %v285_v60 = vperm.slane %v272_v55, %v279_v50 }
 0x13c   :  { %v282_v57 = vperm.slane %v271_v53, %v281_v52 }
 0x13e   :  { %v284_v62 = vsel %vm283_vm1, %v282_v57, %v280_v59 }
 0x13f   :  { %v267_v56 = vpop.xlane.xlu1 %266 }
 0x140   :  { %v273_v58 = vadd.f32 %v269_v51, %v267_v56 }
 0x142   :  { %v286_v61 = vperm.slane %v273_v58, %v281_v52 }
 0x144   :  { %v287_v63 = vsel %vm283_vm1, %v286_v61, %v285_v60 }
 0x145   :  { %v289_v0 = vsel %vm288_vm2, %v287_v63, %v284_v62 }
 0x146   :  { %292 = vst.msk [vmem:[#allocation8] sm:$0x3] %vm291_vm3, %v289_v0 }
 0x14d   :  { %v297_v1 = vld [vmem:[#allocation8] sm:$0x3] }
 0x14e   :  { %v298_v2 = vsel %vm291_vm3, %v297_v1, -inf }
 0x14f   :  { %299 = vmax.xlane.f32.xlu2 %v298_v2 }
 0x1c2   :  { %v300_v3 = vpop.xlane.xlu2 %299 }
 0x1c3   :  { %v301_v4 = vsub.f32 %v297_v1, %v300_v3 }
 0x1c5   :  { %v302_v5 = vmul.f32 1.442695, %v301_v4 }
 0x1c7   :  { %439 = vpow2.f32 %v302_v5 }
 0x1cd   :  { %v440_v6 = vpop.eup %439 }
 0x1ce   :  { %v304_v7 = vsel %vm291_vm3, %v440_v6, 0.0 }
 0x1cf   :  { %305 = vadd.xlane.f32.xlu2 %v304_v7 }
 0x242   :  { %v306_v8 = vpop.xlane.xlu2 %305 }
 0x243   :  { %441 = vrcp.f32 %v306_v8  ;;  %v318_v12 = vand.u32 2147483648, %v306_v8  ;;  %v316_v14 = vand.u32 2147483647, %v306_v8  ;;  %vm312_vm5 = vweird.f32 %v306_v8 }
 0x245   :  { %v319_v16 = vor.u32 1.1754944e-38, %v318_v12  ;;  %vm317_vm7 = vcmp.eq.f32.partialorder %v316_v14, 8.507059e+37 }
 0x249   :  { %v442_v9 = vpop.eup %441 }
 0x24a   :  { %v308_v10 = vmul.f32 %v442_v9, %v306_v8  ;;  %vm313_vm4 = vweird.f32 %v442_v9 }
 0x24b   :  { %vm314_vm6 = vmor %vm312_vm5, %vm313_vm4 }
 0x24c   :  { %v309_v11 = vsub.f32 1.0, %v308_v10 }
 0x24e   :  { %v310_v13 = vmul.f32 %v442_v9, %v309_v11 }
 0x250   :  { %v311_v15 = vadd.f32 %v442_v9, %v310_v13 }
 0x252   :  { %v315_v17 = vsel %vm314_vm6, %v442_v9, %v311_v15 }
 0x253   :  { %v320_v18 = vsel %vm317_vm7, %v319_v16, %v315_v17 }
 0x254   :  { %v321_v19 = vmul.f32 %v440_v6, %v320_v18 }
 0x256   :  { %322 = vst.msk [vmem:[#allocation8] sm:$0x3] %vm291_vm3, %v321_v19 }
 0x257   :  { %333 = dma.vmem_to_hbm [thread:$0]  %s329_s9, 32, %s331_s12, [#allocation5]  }
 0x258   :  { %519 = dma.done.wait [#allocation5], 32  }
 0x259   :  { %520 = vsyncadd [#allocation5], 4294967264 }
 0x25a   :  { %338 = vsyncpa [#allocation4], 1 }
 0x25b   :  { %339 = vsyncpa [#allocation7], 1 }
 0x25c   :  { %340 = vsyncpa [#allocation5], 1 }

</bundles_post_ra>
